<compile_context>
chip_gen: v6e
topology: v6e:2x2x1
jax: 0.10.0
libtpu: 0.0.40
codegen_flags: <defaults>
</compile_context>

<pallas_src>
import jax
import jax.numpy as jnp
from jax import lax
from jax.experimental import pallas as pl
from jax.experimental.pallas import tpu as pltpu

EPS = 1e-5
K = 3  # kernel_size


def _round_up(x, m):
    return (x + m - 1) // m * m


# ------------------------------ kernels -------------------------------------

def _conv_stats_kernel(p_ref, w_ref, y_ref, stats_ref):
    """One MXU matmul per M-tile + per-tile BN partial stats (single pass)."""
    y = jnp.dot(p_ref[...], w_ref[...], preferred_element_type=jnp.float32)
    y_ref[...] = y
    s = jnp.sum(y, axis=0, keepdims=True)           # (1, Cp)
    ss = jnp.sum(y * y, axis=0, keepdims=True)      # (1, Cp)
    stats_ref[...] = jnp.concatenate([s, ss], axis=0).reshape(1, 2, -1)


def _bn_relu_kernel(y_ref, scale_ref, shift_ref, o_ref):
    """Fused affine batch-norm (precomputed per-channel scale/shift) + ReLU."""
    o_ref[...] = jnp.maximum(y_ref[...] * scale_ref[...] + shift_ref[...], 0.0)


# ------------------------- per conv-block wrapper ----------------------------

def _conv_bn_relu_block(x_nhwc, w_hwio, gamma, beta, *, tm=256):
    N, H, W, Cin = x_nhwc.shape
    Cout = w_hwio.shape[-1]
    M = N * H * W
    Kc = K * K * Cin
    Kp = _round_up(Kc, 128)           # lane-dense contraction dim
    Cp = _round_up(Cout, 128)         # lane-dense output channels
    tm = max(8, min(tm, _round_up(M, 8)))
    nt = pl.cdiv(M, tm)
    Mp = nt * tm

    # im2col in the wrapper: the kernel then does a single matmul per conv
    # instead of 9 tiny-K dots + 8 VPU adds and 18 misaligned slice copies.
    xp = jnp.pad(x_nhwc, ((0, 0), (1, 1), (1, 1), (0, 0)))
    cols = [xp[:, kh:kh + H, kw:kw + W, :]
            for kh in range(K) for kw in range(K)]
    patches = jnp.concatenate(cols, axis=-1).reshape(M, Kc)
    patches = jnp.pad(patches, ((0, Mp - M), (0, Kp - Kc)))

    w_mat = jnp.pad(w_hwio.reshape(Kc, Cout), ((0, Kp - Kc), (0, Cp - Cout)))

    y, stats = pl.pallas_call(
        _conv_stats_kernel,
        out_shape=(jax.ShapeDtypeStruct((Mp, Cp), jnp.float32),
                   jax.ShapeDtypeStruct((nt, 2, Cp), jnp.float32)),
        grid_spec=pltpu.PrefetchScalarGridSpec(
            num_scalar_prefetch=0,
            grid=(nt,),
            in_specs=[pl.BlockSpec((tm, Kp), lambda i: (i, 0)),
                      pl.BlockSpec((Kp, Cp), lambda i: (0, 0))],
            out_specs=[pl.BlockSpec((tm, Cp), lambda i: (i, 0)),
                       pl.BlockSpec((1, 2, Cp), lambda i: (i, 0, 0))]),
        compiler_params=pltpu.CompilerParams(
            dimension_semantics=("parallel",)),
    )(patches, w_mat)

    # BN stat finalization (tiny per-channel math).  Conv bias intentionally
    # omitted: it cancels exactly in train-mode BN's (x - mean) and does not
    # affect the variance.  Zero-padded rows/channels contribute zero to the
    # sums, so dividing by the true M keeps the statistics exact.
    s = jnp.sum(stats[:, 0, :], axis=0)
    ss = jnp.sum(stats[:, 1, :], axis=0)
    mean = s / M
    var = ss / M - mean * mean                  # biased variance (PyTorch train)
    g = jnp.pad(gamma, (0, Cp - Cout))
    b = jnp.pad(beta, (0, Cp - Cout))
    scale = g * lax.rsqrt(var + EPS)
    shift = b - mean * scale
    scale = scale.reshape(1, Cp)
    shift = shift.reshape(1, Cp)

    out = pl.pallas_call(
        _bn_relu_kernel,
        out_shape=jax.ShapeDtypeStruct((Mp, Cp), jnp.float32),
        grid_spec=pltpu.PrefetchScalarGridSpec(
            num_scalar_prefetch=0,
            grid=(nt,),
            in_specs=[pl.BlockSpec((tm, Cp), lambda i: (i, 0)),
                      pl.BlockSpec((1, Cp), lambda i: (0, 0)),
                      pl.BlockSpec((1, Cp), lambda i: (0, 0))],
            out_specs=pl.BlockSpec((tm, Cp), lambda i: (i, 0))),
        compiler_params=pltpu.CompilerParams(
            dimension_semantics=("parallel",)),
    )(y, scale, shift)

    return out[:M, :Cout].reshape(N, H, W, Cout)


def double_conv2d_bn_pallas(x_nchw, params, *, tm=256):
    w1, b1, g1, bt1, w2, b2, g2, bt2 = params
    del b1, b2  # conv bias before train-mode BN is a mathematical no-op
    x = jnp.transpose(x_nchw, (0, 2, 3, 1))           # NCHW -> NHWC
    y = _conv_bn_relu_block(x, w1, g1, bt1, tm=tm)
    y = _conv_bn_relu_block(y, w2, g2, bt2, tm=tm)
    return jnp.transpose(y, (0, 3, 1, 2))             # NHWC -> NCHW


# ------------------------------ reference ------------------------------------

def double_conv2d_bn_ref(x_nchw, params):
    """Pure-JAX reference matching the PyTorch training-mode forward."""
    w1, b1, g1, bt1, w2, b2, g2, bt2 = params
    dn = ('NHWC', 'HWIO', 'NHWC')
    x = jnp.transpose(x_nchw, (0, 2, 3, 1))

    def block(x, w, b, g, bt):
        y = lax.conv_general_dilated(x, w, (1, 1), ((1, 1), (1, 1)),
                                     dimension_numbers=dn) + b
        mean = jnp.mean(y, axis=(0, 1, 2))
        var = jnp.mean((y - mean) ** 2, axis=(0, 1, 2))
        y = (y - mean) * lax.rsqrt(var + EPS) * g + bt
        return jnp.maximum(y, 0.0)

    y = block(x, w1, b1, g1, bt1)
    y = block(y, w2, b2, g2, bt2)
    return jnp.transpose(y, (0, 3, 1, 2))


if __name__ == "__main__":
    N, Cin, Cout, H, W = 2, 4, 8, 16, 16

    key = jax.random.PRNGKey(0)
    ks = jax.random.split(key, 9)
    x = jax.random.normal(ks[0], (N, Cin, H, W), jnp.float32)

    # Deterministic synthetic parameters (shapes from the module's __init__).
    w1 = jax.random.normal(ks[1], (K, K, Cin, Cout), jnp.float32) * 0.1
    b1 = jax.random.normal(ks[2], (Cout,), jnp.float32) * 0.1
    g1 = 1.0 + 0.1 * jax.random.normal(ks[3], (Cout,), jnp.float32)
    bt1 = 0.1 * jax.random.normal(ks[4], (Cout,), jnp.float32)
    w2 = jax.random.normal(ks[5], (K, K, Cout, Cout), jnp.float32) * 0.1
    b2 = jax.random.normal(ks[6], (Cout,), jnp.float32) * 0.1
    g2 = 1.0 + 0.1 * jax.random.normal(ks[7], (Cout,), jnp.float32)
    bt2 = 0.1 * jax.random.normal(ks[8], (Cout,), jnp.float32)
    params = (w1, b1, g1, bt1, w2, b2, g2, bt2)

    out = jax.block_until_ready(double_conv2d_bn_pallas(x, params))
    ref = jax.block_until_ready(double_conv2d_bn_ref(x, params))

    assert out.shape == (N, Cout, H, W), out.shape
    assert jnp.allclose(out, ref, atol=1e-4, rtol=1e-4), (
        float(jnp.max(jnp.abs(out - ref))))
    print("KERNEL_OK")
</pallas_src>

<mosaic_0001>
module attributes {stable_mosaic.version = 11 : i64} {
  func.func @_conv_stats_kernel(%arg0: i32, %arg1: memref<256x128xf32, #tpu.memory_space<vmem>>, %arg2: memref<128x128xf32, #tpu.memory_space<vmem>>, %arg3: memref<256x128xf32, #tpu.memory_space<vmem>>, %arg4: memref<1x2x128xf32, #tpu.memory_space<vmem>>) attributes {dimension_semantics = [#tpu.dimension_semantics<parallel>], iteration_bounds = array<i64: 2>, scalar_prefetch = 0 : i64, scratch_operands = 0 : i64, tpu.core_type = #tpu.core_type<tc>, window_params = [{transform_indices = @transform_0, window_bounds = array<i64: 256, 128>}, {pipeline_mode = #tpu.pipeline_mode<synchronous>, transform_indices = @transform_1, window_bounds = array<i64: 128, 128>}, {transform_indices = @transform_2, window_bounds = array<i64: 256, 128>}, {transform_indices = @transform_3, window_bounds = array<i64: 1, 2, 128>}]} {
    %c0 = arith.constant 0 : index
    %c0_0 = arith.constant 0 : index
    %0 = vector.load %arg1[%c0, %c0_0] : memref<256x128xf32, #tpu.memory_space<vmem>>, vector<256x128xf32>
    %c0_1 = arith.constant 0 : index
    %c0_2 = arith.constant 0 : index
    %1 = vector.load %arg2[%c0_1, %c0_2] : memref<128x128xf32, #tpu.memory_space<vmem>>, vector<128x128xf32>
    %cst = arith.constant dense<0.000000e+00> : vector<256x128xf32>
    %2 = tpu.matmul %0, %1, %cst {dimension_numbers = #tpu.dot_dimension_numbers<[1], [0], [0], [1], [0, 0, 1, 1], [], []>} : vector<256x128xf32>, vector<128x128xf32>, vector<256x128xf32> -> vector<256x128xf32>
    %c0_3 = arith.constant 0 : index
    %c0_4 = arith.constant 0 : index
    %3 = vector.load %arg3[%c0_3, %c0_4] : memref<256x128xf32, #tpu.memory_space<vmem>>, vector<256x128xf32>
    tpu.vector_store %arg3[%c0_3, %c0_4], %2 {strides = array<i32>} : memref<256x128xf32, #tpu.memory_space<vmem>>, vector<256x128xf32>,
    %cst_5 = arith.constant dense<0.000000e+00> : vector<128xf32>
    %4 = vector.multi_reduction <add>, %2, %cst_5 [0] : vector<256x128xf32> to vector<128xf32>
    %5 = vector.shape_cast %4 : vector<128xf32> to vector<1x128xf32>
    %6 = arith.mulf %2, %2 : vector<256x128xf32>
    %cst_6 = arith.constant dense<0.000000e+00> : vector<128xf32>
    %7 = vector.multi_reduction <add>, %6, %cst_6 [0] : vector<256x128xf32> to vector<128xf32>
    %8 = vector.shape_cast %7 : vector<128xf32> to vector<1x128xf32>
    %9 = tpu.concatenate %5, %8 in 0 : vector<1x128xf32>, vector<1x128xf32> -> vector<2x128xf32>
    %10 = vector.shape_cast %9 : vector<2x128xf32> to vector<1x2x128xf32>
    %c0_7 = arith.constant 0 : index
    %c0_8 = arith.constant 0 : index
    %c0_9 = arith.constant 0 : index
    %11 = vector.load %arg4[%c0_7, %c0_8, %c0_9] : memref<1x2x128xf32, #tpu.memory_space<vmem>>, vector<1x2x128xf32>
    tpu.vector_store %arg4[%c0_7, %c0_8, %c0_9], %10 {strides = array<i32>} : memref<1x2x128xf32, #tpu.memory_space<vmem>>, vector<1x2x128xf32>,
    return
  }
  func.func @transform_0(%arg0: i32) -> (i32, i32) {
    %c0_i32 = arith.constant 0 : i32
    %c0_i32_0 = arith.constant 0 : i32
    return %arg0, %c0_i32 : i32, i32
  }
  func.func @transform_1(%arg0: i32) -> (i32, i32) {
    %c0_i32 = arith.constant 0 : i32
    %c0_i32_0 = arith.constant 0 : i32
    %c0_i32_1 = arith.constant 0 : i32
    return %c0_i32, %c0_i32_0 : i32, i32
  }
  func.func @transform_2(%arg0: i32) -> (i32, i32) {
    %c0_i32 = arith.constant 0 : i32
    %c0_i32_0 = arith.constant 0 : i32
    return %arg0, %c0_i32 : i32, i32
  }
  func.func @transform_3(%arg0: i32) -> (i32, i32, i32) {
    %c0_i32 = arith.constant 0 : i32
    %c0_i32_0 = arith.constant 0 : i32
    %c0_i32_1 = arith.constant 0 : i32
    return %arg0, %c0_i32, %c0_i32_0 : i32, i32, i32
  }
}

</mosaic_0001>

<bundles_post_ra>
// kernel: tpu_custom_call.1
= control target key start
LH: loop header
LB: loop body
LE: loop exit
PB: predicated region body
PF: predicated region fallthrough
CT: control target
= control target key end

     0   :  { %9 = vsyncpa [#allocation3], 0  ;;  %s1583_s0 = inlined_call_operand.hbm [shape: f32[512,128], index: 0, kind: input, shape index: {}]   ;;  %s1584_s1 = inlined_call_operand.hbm [shape: f32[128,128], index: 1, kind: input, shape index: {}]   ;;  %s1585_s2 = inlined_call_operand.hbm [shape: f32[512,128], index: 2, kind: output, shape index: {0}]   ;;  %s1586_s3 = inlined_call_operand.hbm [shape: f32[2,2,128], index: 3, kind: output, shape index: {1}]  }
   0x1   :  { %11 = vsyncpa [#allocation3 + $0x1], 0 }
   0x2   :  { %12 = vsyncpa [#allocation6], 0 }
   0x3   :  { %13 = vsyncpa [#allocation4], 0 }
   0x4   :  { %15 = vsyncpa [#allocation4 + $0x1], 0 }
   0x5   :  { %16 = vsyncpa [#allocation9], 0 }
   0x6   :  { %18 = vsyncpa [#allocation9 + $0x1], 0  ;;  %s1207_s12 = smov 0   ;;  %s1209_s13 = smov 0  }
   0x7   :  { %s1211_s14 = smov 0   ;;  %s1213_s15 = smov 0  }
   0x8 LB: > { %s1228_s16 = sadd.s32 4294967295, %s1177_s15   ;;  %s778_s17 = sadd.s32 4294967294, %s1177_s15   ;;  %s1177_s15 = sphi %s1213_s15, %s1608_s15   ;;  %s1173_s14 = sphi %s1211_s14, %s1607_s14   ;;  %s1169_s13 = sphi %s1209_s13, %s1606_s13   ;;  %s1165_s12 = sphi %s1207_s12, %s1605_s12  }
   0x9   : > { %p44_p0 = scmp.ne.s32.totalorder %s1169_s13, %s1165_s12  ;;  %p1587_p1 = scmp.eq.s32.totalorder %s1228_s16, 0 }
   0xa   : > { %p95_p3 = scmp.eq.s32.totalorder %s778_s17, 1  ;;  %p779_p5 = scmp.ge.s32.totalorder %s1177_s15, 1 }
   0xb   : > { %p1237_p4 = por %p1587_p1, %p44_p0  ;;  %p128_p7 = scmp.lt.s32.totalorder %s1177_s15, 3 }
   0xc   : > { %p1242_p6 = por %p95_p3, %p44_p0  ;;  %s1179_s21 = smov [#allocation5]  }
   0xd   : > { %s1591_s18 = scalar_select %p1237_p4, 1, 0 }
   0xe   : > { %s1592_s19 = scalar_select %p1242_p6, 1, 0 }
   0xf   : > { %p1247_p8 = pnand %p779_p5, %p128_p7  ;;  %s140_s22 = sshll.u32 %s1179_s21, 4  ;;  %s141_s22 = int_to_ptr.vmem [resolvable:$true] %s140_s22 }
  0x10   : > { %s1261_s24 = sadd.s32 1, %s1177_s15   ;;  %s31_s25 = sadd.s32 1, %s1173_s14 }
  0x11   : > { %s1593_s20 = scalar_select %p1247_p8, 1, 0 }
  0x12   : > { %p969_p9 = pneg %p1247_p8  ;;  %s28_s26 = ssub.s32 %s1177_s15, %s1261_s24 }
  0x13   : > { %s1036_s27 = scalar_lea.vmem %s141_s22, 2048  ;;  %p1044_p5 = scmp.lt.s32.totalorder %s141_s22, %s141_s22 }
  0x14   : > { %p1256_p11 = pnand %p969_p9, %p1587_p1  ;;  %p1037_p13 = scmp.ne.s32.totalorder %s141_s22, %s1036_s27 }
  0x15   : > { %p1045_p7 = scmp.lt.s32.totalorder %s1036_s27, %s1036_s27 }
  0x16   : > { %p1027_p12 = pneg %p1256_p11 }
  0x17   : > { %p1046_p10 = por %p1045_p7, %p1044_p5 }
  0x18   : > { %p1039_p0 = pnand %p1037_p13, %p1027_p12 }
  0x1a   : > { %p1040_p3 = pneg %p1039_p0 }
  0x1c   : > { %p1047_p2 = pnand %p1046_p10, %p1040_p3 }
  0x1e   : > { %1050 = shalt.err (!%p1047_p2)
}
  0x1f   : > { %s1180_s28 = smov 128   ;;  %s1181_s29 = smov 8  }
  0x20   : > { %972 = dma.hbm_to_vmem [thread:$0]  (!%p1256_p11), %s1584_s1, 2048, %s141_s22, [#allocation6], %s1180_s28, %s1180_s28, %s1181_s29  }
  0x21   : > { %p29_p2 = scmp.eq.s32.totalorder %s28_s26, 0  ;;  %p38_p9 = scmp.ne.s32.totalorder %s1173_s14, %s1169_s13 }
  0x22   : > { %p39_p10 = scmp.eq.s32.totalorder %s1177_s15, 0  ;;  %p985_p12 = scmp.lt.s32.totalorder %s1177_s15, 2 }
  0x23   : > { %s1281_s5 = scalar_select %p29_p2, %s1173_s14, %s31_s25  }
  0x24   : > { %p40_p13 = por %p39_p10, %p38_p9  ;;  %p1595_p0 = scmp.eq.s32.totalorder %s1228_s16, 1 }
  0x25   : > { %s154_s7 = sand.u32 1, %s1173_s14   ;;  %s797_s8 = sshll.u32 %s1177_s15, 12 }
  0x26   : > { %p1285_p3 = por %p1595_p0, %p38_p9  ;;  %s782_s9 = sshll.u32 %s154_s7, 8 }
  0x27   : > { %s1294_s17 = scalar_lea.hbm %s1583_s0, %s797_s8  ;;  %s158_s21 = scalar_lea.vmem [#allocation2], %s782_s9 }
  0x28   : > { %s1596_s6 = scalar_select %p1285_p3, 1, 0 }
  0x29   : > { %s165_s22 = sshll.u32 %s158_s21, 4  ;;  %p1296_p11 = pnand %p985_p12, %p40_p13  ;;  %s1300_s22 = int_to_ptr.vmem [resolvable:$true] %s165_s22 }
  0x2a   : > { %s1302_s25 = scalar_lea.sflag [#allocation3], %s154_s7  ;;  %s1051_s26 = scalar_lea.hbm %s1294_s17, 4096 }
  0x2b   : > { %p1052_p5 = scmp.ne.s32.totalorder %s1294_s17, %s1051_s26  ;;  %p1053_p7 = pneg %p1296_p11 }
  0x2c   : > { %s1056_s4 = scalar_lea.hbm %s1583_s0, 8192  ;;  %p1057_p10 = scmp.lt.s32.totalorder %s1294_s17, %s1583_s0 }
  0x2d   : > { %p1054_p2 = pnand %p1053_p7, %p1052_p5  ;;  %p1058_p12 = scmp.lt.s32.totalorder %s1056_s4, %s1051_s26 }
  0x2f   : > { %p1055_p9 = pneg %p1054_p2  ;;  %p1059_p13 = por %p1058_p12, %p1057_p10 }
  0x31   : > { %p1060_p0 = pnand %p1059_p13, %p1055_p9 }
  0x33   : > { %1063 = shalt.err (!%p1060_p0)
}
  0x34   : > { %s1064_s7 = scalar_lea.vmem %s1300_s22, 4096  ;;  %s1182_s10 = smov [#allocation2]  }
  0x35   : > { %p1065_p1 = scmp.ne.s32.totalorder %s1300_s22, %s1064_s7  ;;  %s1069_s11 = sshll.u32 %s1182_s10, 4  ;;  %s1070_s11 = int_to_ptr.vmem [resolvable:$false] %s1069_s11 }
  0x36   : > { %s1071_s21 = scalar_lea.vmem %s1070_s11, 8192  ;;  %p1072_p2 = scmp.lt.s32.totalorder %s1300_s22, %s1070_s11 }
  0x37   : > { %p1067_p6 = pnand %p1065_p1, %p1053_p7  ;;  %p1073_p3 = scmp.lt.s32.totalorder %s1071_s21, %s1064_s7 }
  0x39   : > { %p1068_p5 = pneg %p1067_p6  ;;  %p1074_p4 = por %p1073_p3, %p1072_p2 }
  0x3b   : > { %p1075_p8 = pnand %p1074_p4, %p1068_p5 }
  0x3d   : > { %1078 = shalt.err (!%p1075_p8)
}
  0x3e   : > { %976 = dma.hbm_to_vmem [thread:$0]  (!%p1296_p11), %s1294_s17, 4096, %s1300_s22, %s1302_s25, %s1180_s28, %s1180_s28, %s1181_s29  }
  0x3f   : > { %p1598_p1 = scmp.ne.s32.totalorder %s1593_s20, 0 }
  0x40   : > { %s1329_s26 = sand.u32 (!%p1598_p1), 1, %s1169_s13   ;;  %p1599_p4 = scmp.ne.s32.totalorder (!%p1598_p1), %s1591_s18, 0 }
  0x41   : > { %177 = sbr.rel (%p1598_p1) target bundleno = 404 (0x194), region = 28  ;;  %s786_s27 = sshll.u32 (!%p1598_p1), %s1329_s26, 8 }
  0x42   : > { %s180_s30 = scalar_lea.sflag (!%p1598_p1), [#allocation3], %s1329_s26  ;;  %s1335_s23 = scalar_lea.vmem (!%p1598_p1), [#allocation2], %s786_s27 }
  0x46   : > { %1148 = dma.done.wait (%p1599_p4), %s180_s30, 4096  }
  0x47   : > { %1150 = vsyncadd (%p1599_p4), %s180_s30, 4294963200  ;;  %p1600_p6 = scmp.eq.s32.totalorder %s1228_s16, 0 }
  0x49   : > { %1152 = dma.done.wait (%p1600_p6), [#allocation6], 2048   ;;  %p1601_p8 = pmov %p1600_p6 }
  0x4a   : > { %v264_v0 = vld [vmem:[#allocation5 + $0x78] sm:$0xff]  ;;  %v263_v1 = vld [vmem:[#allocation5 + $0x70] sm:$0xff]  ;;  %v262_v2 = vld [vmem:[#allocation5 + $0x68] sm:$0xff]  ;;  %s1379_s18 = scalar_lea.vmem [#allocation7], %s786_s27  ;;  %s798_s20 = sshll.u32 %s1228_s16, 12 }
  0x4b   : > { %1154 = vsyncadd (%p1601_p8), [#allocation6], 4294965248  ;;  %847 = vmatprep.subr.mxu0 %v264_v0  ;;  %927 = vmatprep.subr.mxu1 %v264_v0  ;;  %v261_v3 = vld [vmem:[#allocation5 + $0x60] sm:$0xff]  ;;  %v260_v5 = vld [vmem:[#allocation5 + $0x58] sm:$0xff]  ;;  %s650_s28 = sshll.u32 %s1379_s18, 4  ;;  %s1459_s22 = scalar_lea.hbm %s1585_s2, %s798_s20  ;;  %s1461_s28 = int_to_ptr.vmem [resolvable:$true] %s650_s28 }
  0x4c   : > { %848 = vmatpush3.msra.mxu0 %v264_v0  ;;  %943 = vmatpush3.msra.mxu1 %v264_v0  ;;  %v217_v4 = vld [vmem:[%s1335_s23] sm:$0xff]  ;;  %v259_v6 = vld [vmem:[#allocation5 + $0x50] sm:$0xff]  ;;  %v258_v7 = vld [vmem:[#allocation5 + $0x48] sm:$0xff]  ;;  %s632_s25 = scalar_lea.sflag [#allocation4], %s1329_s26  ;;  %s1079_s4 = scalar_lea.vmem %s1461_s28, 4096 }
  0x4d   : > { %849 = vmatprep.subr.mxu0 %v263_v1  ;;  %928 = vmatprep.subr.mxu1 %v263_v1  ;;  %v257_v8 = vld [vmem:[#allocation5 + $0x40] sm:$0xff]  ;;  %v256_v9 = vld [vmem:[#allocation5 + $0x38] sm:$0xff]  ;;  %v255_v10 = vld [vmem:[#allocation5 + $0x30] sm:$0xff]  ;;  %p1080_p3 = scmp.ne.s32.totalorder %s1461_s28, %s1079_s4  ;;  %p1602_p11 = scmp.ne.s32.totalorder %s1596_s6, 0 }
  0x4e   : > { %850 = vmatpush3.msra.mxu0 %v263_v1  ;;  %944 = vmatpush3.msra.mxu1 %v263_v1  ;;  %v254_v11 = vld [vmem:[#allocation5 + $0x28] sm:$0xff]  ;;  %v253_v12 = vld [vmem:[#allocation5 + $0x20] sm:$0xff]  ;;  %v252_v13 = vld [vmem:[#allocation5 + $0x18] sm:$0xff]  ;;  %s1183_s8 = smov [#allocation7]  }
  0x4f   : > { %851 = vmatprep.subr.mxu0 %v262_v2  ;;  %929 = vmatprep.subr.mxu1 %v262_v2  ;;  %v251_v14 = vld [vmem:[#allocation5 + $0x10] sm:$0xff]  ;;  %v250_v15 = vld [vmem:[#allocation5 + $0x8] sm:$0xff]  ;;  %v249_v16 = vld [vmem:[#allocation5] sm:$0xff]  ;;  %p1081_p7 = pnand %p1080_p3, %p1602_p11  ;;  %s1083_s9 = sshll.u32 %s1183_s8, 4  ;;  %s1084_s9 = int_to_ptr.vmem [resolvable:$false] %s1083_s9 }
  0x50   : > { %852 = vmatpush3.msra.mxu0 %v262_v2  ;;  %879 = vmatprep.mubr.f32.mxu0 %v217_v4  ;;  %v218_v17 = vld [vmem:[%s1335_s23 + $0x8] sm:$0xff]  ;;  %v219_v18 = vld [vmem:[%s1335_s23 + $0x10] sm:$0xff]  ;;  %v233_v19 = vld [vmem:[%s1335_s23 + $0x80] sm:$0xff]  ;;  %s1085_s7 = scalar_lea.vmem %s1084_s9, 8192  ;;  %p1086_p10 = scmp.lt.s32.totalorder %s1461_s28, %s1084_s9 }
  0x51   : > { %853 = vmatprep.subr.mxu0 %v261_v3  ;;  %945 = vmatpush3.msra.mxu1 %v262_v2  ;;  %v234_v20 = vld [vmem:[%s1335_s23 + $0x88] sm:$0xff]  ;;  %v235_v21 = vld [vmem:[%s1335_s23 + $0x90] sm:$0xff]  ;;  %v220_v22 = vld [vmem:[%s1335_s23 + $0x18] sm:$0xff]  ;;  %p1082_p9 = pneg %p1081_p7  ;;  %p1087_p12 = scmp.lt.s32.totalorder %s1085_s7, %s1079_s4 }
  0x52   : > { %854 = vmatpush3.msra.mxu0 %v261_v3  ;;  %930 = vmatprep.subr.mxu1 %v261_v3  ;;  %v221_v23 = vld [vmem:[%s1335_s23 + $0x20] sm:$0xff]  ;;  %v236_v24 = vld [vmem:[%s1335_s23 + $0x98] sm:$0xff]  ;;  %v222_v26 = vld [vmem:[%s1335_s23 + $0x28] sm:$0xff] }
  0x53   : > { %855 = vmatprep.subr.mxu0 %v260_v5  ;;  %946 = vmatpush3.msra.mxu1 %v261_v3  ;;  %v237_v25 = vld [vmem:[%s1335_s23 + $0xa0] sm:$0xff]  ;;  %v223_v27 = vld [vmem:[%s1335_s23 + $0x30] sm:$0xff]  ;;  %v238_v28 = vld [vmem:[%s1335_s23 + $0xa8] sm:$0xff]  ;;  %p1088_p13 = por %p1087_p12, %p1086_p10 }
  0x54   : > { %856 = vmatpush3.msra.mxu0 %v260_v5  ;;  %931 = vmatprep.subr.mxu1 %v260_v5  ;;  %v239_v29 = vld [vmem:[%s1335_s23 + $0xb0] sm:$0xff]  ;;  %v224_v30 = vld [vmem:[%s1335_s23 + $0x38] sm:$0xff]  ;;  %v225_v31 = vld [vmem:[%s1335_s23 + $0x40] sm:$0xff] }
  0x55   : > { %857 = vmatprep.subr.mxu0 %v259_v6  ;;  %947 = vmatpush3.msra.mxu1 %v260_v5  ;;  %v240_v32 = vld [vmem:[%s1335_s23 + $0xb8] sm:$0xff]  ;;  %v241_v33 = vld [vmem:[%s1335_s23 + $0xc0] sm:$0xff]  ;;  %v226_v34 = vld [vmem:[%s1335_s23 + $0x48] sm:$0xff]  ;;  %p1089_p0 = pnand %p1088_p13, %p1082_p9 }
  0x56   : > { %858 = vmatpush3.msra.mxu0 %v259_v6  ;;  %932 = vmatprep.subr.mxu1 %v259_v6  ;;  %v227_v35 = vld [vmem:[%s1335_s23 + $0x50] sm:$0xff]  ;;  %v242_v36 = vld [vmem:[%s1335_s23 + $0xc8] sm:$0xff]  ;;  %v228_v38 = vld [vmem:[%s1335_s23 + $0x58] sm:$0xff] }
  0x57   : > { %859 = vmatprep.subr.mxu0 %v258_v7  ;;  %948 = vmatpush3.msra.mxu1 %v259_v6  ;;  %v243_v37 = vld [vmem:[%s1335_s23 + $0xd0] sm:$0xff]  ;;  %v229_v39 = vld [vmem:[%s1335_s23 + $0x60] sm:$0xff]  ;;  %v244_v40 = vld [vmem:[%s1335_s23 + $0xd8] sm:$0xff] }
  0x58   : > { %860 = vmatpush3.msra.mxu0 %v258_v7  ;;  %933 = vmatprep.subr.mxu1 %v258_v7  ;;  %v245_v41 = vld [vmem:[%s1335_s23 + $0xe0] sm:$0xff]  ;;  %v230_v42 = vld [vmem:[%s1335_s23 + $0x68] sm:$0xff]  ;;  %v231_v43 = vld [vmem:[%s1335_s23 + $0x70] sm:$0xff] }
  0x59   : > { %861 = vmatprep.subr.mxu0 %v257_v8  ;;  %949 = vmatpush3.msra.mxu1 %v258_v7  ;;  %v246_v44 = vld [vmem:[%s1335_s23 + $0xe8] sm:$0xff]  ;;  %v247_v45 = vld [vmem:[%s1335_s23 + $0xf0] sm:$0xff]  ;;  %v232_v46 = vld [vmem:[%s1335_s23 + $0x78] sm:$0xff] }
  0x5a   : > { %862 = vmatpush3.msra.mxu0 %v257_v8  ;;  %934 = vmatprep.subr.mxu1 %v257_v8  ;;  %v248_v47 = vld [vmem:[%s1335_s23 + $0xf8] sm:$0xff] }
  0x5b   : > { %863 = vmatprep.subr.mxu0 %v256_v9  ;;  %950 = vmatpush3.msra.mxu1 %v257_v8 }
  0x5c   : > { %864 = vmatpush3.msra.mxu0 %v256_v9  ;;  %935 = vmatprep.subr.mxu1 %v256_v9 }
  0x5d   : > { %865 = vmatprep.subr.mxu0 %v255_v10  ;;  %951 = vmatpush3.msra.mxu1 %v256_v9 }
  0x5e   : > { %866 = vmatpush3.msra.mxu0 %v255_v10  ;;  %936 = vmatprep.subr.mxu1 %v255_v10 }
  0x5f   : > { %867 = vmatprep.subr.mxu0 %v254_v11  ;;  %952 = vmatpush3.msra.mxu1 %v255_v10 }
  0x60   : > { %868 = vmatpush3.msra.mxu0 %v254_v11  ;;  %937 = vmatprep.subr.mxu1 %v254_v11 }
  0x61   : > { %869 = vmatprep.subr.mxu0 %v253_v12  ;;  %953 = vmatpush3.msra.mxu1 %v254_v11 }
  0x62   : > { %870 = vmatpush3.msra.mxu0 %v253_v12  ;;  %938 = vmatprep.subr.mxu1 %v253_v12 }
  0x63   : > { %871 = vmatprep.subr.mxu0 %v252_v13  ;;  %954 = vmatpush3.msra.mxu1 %v253_v12 }
  0x64   : > { %872 = vmatpush3.msra.mxu0 %v252_v13  ;;  %939 = vmatprep.subr.mxu1 %v252_v13 }
  0x65   : > { %873 = vmatprep.subr.mxu0 %v251_v14  ;;  %955 = vmatpush3.msra.mxu1 %v252_v13 }
  0x66   : > { %874 = vmatpush3.msra.mxu0 %v251_v14  ;;  %940 = vmatprep.subr.mxu1 %v251_v14 }
  0x67   : > { %875 = vmatprep.subr.mxu0 %v250_v15  ;;  %956 = vmatpush3.msra.mxu1 %v251_v14 }
  0x68   : > { %876 = vmatpush3.msra.mxu0 %v250_v15  ;;  %941 = vmatprep.subr.mxu1 %v250_v15 }
  0x69   : > { %877 = vmatprep.subr.mxu0 %v249_v16  ;;  %957 = vmatpush3.msra.mxu1 %v250_v15 }
  0x6a   : > { %878 = vmatpush3.msra.mxu0 %v249_v16  ;;  %942 = vmatprep.subr.mxu1 %v249_v16 }
  0x6b   : > { %880 = vmatmul.mubr.f32.vlgmr.msra.gmra.mxu0 %v218_v17  ;;  %958 = vmatpush3.msra.mxu1 %v249_v16 }
  0x6c   : > { %882 = vmatprep.mubr.f32.mxu0 %v219_v18  ;;  %903 = vmatprep.mubr.f32.mxu1 %v233_v19 }
  0x6d   : > { %904 = vmatmul.mubr.f32.vlgmr.msra.gmra.mxu1 %v234_v20 }
  0x6e   : > { %906 = vmatprep.mubr.f32.mxu1 %v235_v21 }
  0x6f   : > { %883 = vmatmul.mubr.f32.gmra.mxu0 %v220_v22 }
  0x70   : > { %885 = vmatprep.mubr.f32.mxu0 %v221_v23 }
  0x71   : > { %907 = vmatmul.mubr.f32.gmra.mxu1 %v236_v24 }
  0x72   : > { %909 = vmatprep.mubr.f32.mxu1 %v237_v25 }
  0x73   : > { %886 = vmatmul.mubr.f32.gmra.mxu0 %v222_v26 }
  0x74   : > { %888 = vmatprep.mubr.f32.mxu0 %v223_v27 }
  0x75   : > { %910 = vmatmul.mubr.f32.gmra.mxu1 %v238_v28 }
  0x76   : > { %912 = vmatprep.mubr.f32.mxu1 %v239_v29 }
  0x77   : > { %889 = vmatmul.mubr.f32.gmra.mxu0 %v224_v30 }
  0x78   : > { %891 = vmatprep.mubr.f32.mxu0 %v225_v31 }
  0x79   : > { %913 = vmatmul.mubr.f32.gmra.mxu1 %v240_v32 }
  0x7a   : > { %915 = vmatprep.mubr.f32.mxu1 %v241_v33 }
  0x7b   : > { %892 = vmatmul.mubr.f32.gmra.mxu0 %v226_v34 }
  0x7c   : > { %894 = vmatprep.mubr.f32.mxu0 %v227_v35 }
  0x7d   : > { %916 = vmatmul.mubr.f32.gmra.mxu1 %v242_v36 }
  0x7e   : > { %918 = vmatprep.mubr.f32.mxu1 %v243_v37 }
  0x7f   : > { %895 = vmatmul.mubr.f32.gmra.mxu0 %v228_v38 }
  0x80   : > { %897 = vmatprep.mubr.f32.mxu0 %v229_v39 }
  0x81   : > { %919 = vmatmul.mubr.f32.gmra.mxu1 %v244_v40 }
  0x82   : > { %921 = vmatprep.mubr.f32.mxu1 %v245_v41 }
  0x83   : > { %898 = vmatmul.mubr.f32.gmra.mxu0 %v230_v42 }
  0x84   : > { %900 = vmatprep.mubr.f32.mxu0 %v231_v43 }
  0x85   : > { %922 = vmatmul.mubr.f32.gmra.mxu1 %v246_v44 }
  0x86   : > { %924 = vmatprep.mubr.f32.mxu1 %v247_v45 }
  0x87   : > { %901 = vmatmul.mubr.f32.gmra.mxu0 %v232_v46 }
  0x89   : > { %925 = vmatmul.mubr.f32.gmra.mxu1 %v248_v47 }
 0x12b   : > { %v881_v48 = vpop.f32.mrf.mxu0 }
 0x12c   : > { %491 = vst [vmem:[%s1379_s18 + $0x8] sm:$0xff] %v881_v48  ;;  %v560_v54 = vmul.f32 %v881_v48, %v881_v48 }
 0x12d   : > { %v331_v49 = vpop.f32.mrf.mxu0  ;;  %v1382_v50 = vpop.f32.mrf.mxu1 }
 0x12e   : > { %490 = vst [vmem:[%s1379_s18] sm:$0xff] %v331_v49  ;;  %v559_v51 = vmul.f32 %v331_v49, %v331_v49  ;;  %507 = vst [vmem:[%s1379_s18 + $0x88] sm:$0xff] %v1382_v50  ;;  %v522_v55 = vadd.f32 %v881_v48, %v331_v49 }
 0x12f   : > { %v884_v52 = vpop.f32.mrf.mxu0  ;;  %v1387_v53 = vpop.f32.mrf.mxu1 }
 0x130   : > { %493 = vst [vmem:[%s1379_s18 + $0x18] sm:$0xff] %v884_v52  ;;  %506 = vst [vmem:[%s1379_s18 + $0x80] sm:$0xff] %v1387_v53  ;;  %v591_v58 = vadd.f32 %v560_v54, %v559_v51  ;;  %v562_v63 = vmul.f32 %v884_v52, %v884_v52 }
 0x131   : > { %v341_v56 = vpop.f32.mrf.mxu0  ;;  %v1392_v57 = vpop.f32.mrf.mxu1 }
 0x132   : > { %492 = vst [vmem:[%s1379_s18 + $0x10] sm:$0xff] %v341_v56  ;;  %v523_v59 = vadd.f32 %v522_v55, %v341_v56  ;;  %v561_v60 = vmul.f32 %v341_v56, %v341_v56  ;;  %509 = vst [vmem:[%s1379_s18 + $0x98] sm:$0xff] %v1392_v57 }
 0x133   : > { %v887_v61 = vpop.f32.mrf.mxu0  ;;  %v1397_v62 = vpop.f32.mrf.mxu1 }
 0x134   : > { %v592_v0 = vadd.f32 %v591_v58, %v561_v60  ;;  %495 = vst [vmem:[%s1379_s18 + $0x28] sm:$0xff] %v887_v61  ;;  %v524_v1 = vadd.f32 %v884_v52, %v523_v59  ;;  %508 = vst [vmem:[%s1379_s18 + $0x90] sm:$0xff] %v1397_v62  ;;  %v564_v9 = vmul.f32 %v887_v61, %v887_v61 }
 0x135   : > { %v351_v2 = vpop.f32.mrf.mxu0  ;;  %v1402_v3 = vpop.f32.mrf.mxu1 }
 0x136   : > { %494 = vst [vmem:[%s1379_s18 + $0x20] sm:$0xff] %v351_v2  ;;  %v525_v4 = vadd.f32 %v524_v1, %v351_v2  ;;  %v563_v5 = vmul.f32 %v351_v2, %v351_v2  ;;  %v593_v6 = vadd.f32 %v592_v0, %v562_v63  ;;  %511 = vst [vmem:[%s1379_s18 + $0xa8] sm:$0xff] %v1402_v3 }
 0x137   : > { %v890_v7 = vpop.f32.mrf.mxu0  ;;  %v1407_v8 = vpop.f32.mrf.mxu1 }
 0x138   : > { %v594_v10 = vadd.f32 %v593_v6, %v563_v5  ;;  %497 = vst [vmem:[%s1379_s18 + $0x38] sm:$0xff] %v890_v7  ;;  %v526_v11 = vadd.f32 %v887_v61, %v525_v4  ;;  %510 = vst [vmem:[%s1379_s18 + $0xa0] sm:$0xff] %v1407_v8  ;;  %v566_v19 = vmul.f32 %v890_v7, %v890_v7 }
 0x139   : > { %v361_v12 = vpop.f32.mrf.mxu0  ;;  %v1412_v13 = vpop.f32.mrf.mxu1 }
 0x13a   : > { %496 = vst [vmem:[%s1379_s18 + $0x30] sm:$0xff] %v361_v12  ;;  %v527_v14 = vadd.f32 %v526_v11, %v361_v12  ;;  %v565_v15 = vmul.f32 %v361_v12, %v361_v12  ;;  %v595_v16 = vadd.f32 %v594_v10, %v564_v9  ;;  %513 = vst [vmem:[%s1379_s18 + $0xb8] sm:$0xff] %v1412_v13 }
 0x13b   : > { %v893_v17 = vpop.f32.mrf.mxu0  ;;  %v1417_v18 = vpop.f32.mrf.mxu1 }
 0x13c   : > { %v596_v20 = vadd.f32 %v595_v16, %v565_v15  ;;  %499 = vst [vmem:[%s1379_s18 + $0x48] sm:$0xff] %v893_v17  ;;  %v528_v21 = vadd.f32 %v890_v7, %v527_v14  ;;  %512 = vst [vmem:[%s1379_s18 + $0xb0] sm:$0xff] %v1417_v18  ;;  %v568_v29 = vmul.f32 %v893_v17, %v893_v17 }
 0x13d   : > { %v371_v22 = vpop.f32.mrf.mxu0  ;;  %v1422_v23 = vpop.f32.mrf.mxu1 }
 0x13e   : > { %498 = vst [vmem:[%s1379_s18 + $0x40] sm:$0xff] %v371_v22  ;;  %v529_v24 = vadd.f32 %v528_v21, %v371_v22  ;;  %v567_v25 = vmul.f32 %v371_v22, %v371_v22  ;;  %v597_v26 = vadd.f32 %v596_v20, %v566_v19  ;;  %515 = vst [vmem:[%s1379_s18 + $0xc8] sm:$0xff] %v1422_v23 }
 0x13f   : > { %v896_v27 = vpop.f32.mrf.mxu0  ;;  %v1427_v28 = vpop.f32.mrf.mxu1 }
 0x140   : > { %v598_v30 = vadd.f32 %v597_v26, %v567_v25  ;;  %501 = vst [vmem:[%s1379_s18 + $0x58] sm:$0xff] %v896_v27  ;;  %v530_v31 = vadd.f32 %v893_v17, %v529_v24  ;;  %514 = vst [vmem:[%s1379_s18 + $0xc0] sm:$0xff] %v1427_v28  ;;  %v570_v39 = vmul.f32 %v896_v27, %v896_v27 }
 0x141   : > { %v381_v32 = vpop.f32.mrf.mxu0  ;;  %v1432_v33 = vpop.f32.mrf.mxu1 }
 0x142   : > { %500 = vst [vmem:[%s1379_s18 + $0x50] sm:$0xff] %v381_v32  ;;  %v531_v34 = vadd.f32 %v530_v31, %v381_v32  ;;  %v569_v35 = vmul.f32 %v381_v32, %v381_v32  ;;  %v599_v36 = vadd.f32 %v598_v30, %v568_v29  ;;  %517 = vst [vmem:[%s1379_s18 + $0xd8] sm:$0xff] %v1432_v33 }
 0x143   : > { %v899_v37 = vpop.f32.mrf.mxu0  ;;  %v1437_v38 = vpop.f32.mrf.mxu1 }
 0x144   : > { %v600_v40 = vadd.f32 %v599_v36, %v569_v35  ;;  %503 = vst [vmem:[%s1379_s18 + $0x68] sm:$0xff] %v899_v37  ;;  %v532_v41 = vadd.f32 %v896_v27, %v531_v34  ;;  %516 = vst [vmem:[%s1379_s18 + $0xd0] sm:$0xff] %v1437_v38  ;;  %v572_v49 = vmul.f32 %v899_v37, %v899_v37 }
 0x145   : > { %v391_v42 = vpop.f32.mrf.mxu0  ;;  %v1442_v43 = vpop.f32.mrf.mxu1 }
 0x146   : > { %502 = vst [vmem:[%s1379_s18 + $0x60] sm:$0xff] %v391_v42  ;;  %v533_v44 = vadd.f32 %v532_v41, %v391_v42  ;;  %v571_v45 = vmul.f32 %v391_v42, %v391_v42  ;;  %v601_v46 = vadd.f32 %v600_v40, %v570_v39  ;;  %519 = vst [vmem:[%s1379_s18 + $0xe8] sm:$0xff] %v1442_v43 }
 0x147   : > { %v902_v47 = vpop.f32.mrf.mxu0  ;;  %v1449_v48 = vpop.f32.mrf.mxu1 }
 0x148   : > { %v602_v51 = vadd.f32 %v601_v46, %v571_v45  ;;  %505 = vst [vmem:[%s1379_s18 + $0x78] sm:$0xff] %v902_v47  ;;  %v534_v52 = vadd.f32 %v899_v37, %v533_v44  ;;  %518 = vst [vmem:[%s1379_s18 + $0xe0] sm:$0xff] %v1449_v48  ;;  %v574_v61 = vmul.f32 %v902_v47, %v902_v47 }
 0x149   : > { %v401_v54 = vpop.f32.mrf.mxu0  ;;  %v1454_v55 = vpop.f32.mrf.mxu1 }
 0x14a   : > { %504 = vst [vmem:[%s1379_s18 + $0x70] sm:$0xff] %v401_v54  ;;  %v535_v56 = vadd.f32 %v534_v52, %v401_v54  ;;  %v573_v58 = vmul.f32 %v401_v54, %v401_v54  ;;  %v603_v59 = vadd.f32 %v602_v51, %v572_v49  ;;  %521 = vst [vmem:[%s1379_s18 + $0xf8] sm:$0xff] %v1454_v55 }
 0x14b   : > { %v1466_v60 = vpop.f32.mrf.mxu1 }
 0x14c   : > { %v536_v63 = vadd.f32 %v902_v47, %v535_v56  ;;  %v604_v0 = vadd.f32 %v603_v59, %v573_v58  ;;  %520 = vst [vmem:[%s1379_s18 + $0xf0] sm:$0xff] %v1466_v60 }
 0x14d   : > { %1092 = shalt.err (!%p1089_p0)
}
 0x14e   : > { %s1093_s10 = scalar_lea.hbm %s1459_s22, 4096  ;;  %s1097_s27 = scalar_lea.hbm %s1585_s2, 8192 }
 0x14f   : > { %p1094_p5 = scmp.ne.s32.totalorder %s1459_s22, %s1093_s10  ;;  %p1098_p4 = scmp.lt.s32.totalorder %s1459_s22, %s1585_s2 }
 0x150   : > { %p1099_p6 = scmp.lt.s32.totalorder %s1097_s27, %s1093_s10 }
 0x151   : > { %p1095_p2 = pnand %p1094_p5, %p1602_p11 }
 0x152   : > { %p1100_p8 = por %p1099_p6, %p1098_p4 }
 0x153   : > { %p1096_p1 = pneg %p1095_p2 }
 0x155   : > { %p1101_p3 = pnand %p1100_p8, %p1096_p1 }
 0x157   : > { %1104 = shalt.err (!%p1101_p3)
}
 0x158   : > { %s1184_s18 = smov 128   ;;  %s1185_s20 = smov 8   ;;  %v605_v1 = vadd.f32 %v604_v0, %v574_v61  ;;  %v537_v2 = vadd.f32 %v536_v63, %v1387_v53  ;;  %v575_v4 = vmul.f32 %v1387_v53, %v1387_v53  ;;  %v576_v5 = vmul.f32 %v1382_v50, %v1382_v50 }
 0x159   : > { %965 = dma.vmem_to_hbm [thread:$0]  (%p1602_p11), %s1461_s28, 4096, %s1459_s22, %s632_s25, %s1184_s18, %s1184_s18, %s1185_s20   ;;  %v577_v10 = vmul.f32 %v1397_v62, %v1397_v62  ;;  %v578_v12 = vmul.f32 %v1392_v57, %v1392_v57  ;;  %v579_v16 = vmul.f32 %v1407_v8, %v1407_v8  ;;  %v581_v21 = vmul.f32 %v1417_v18, %v1417_v18 }
 0x15a   : > { %v606_v6 = vadd.f32 %v605_v1, %v575_v4  ;;  %v538_v7 = vadd.f32 %v1382_v50, %v537_v2  ;;  %v580_v50 = vmul.f32 %v1402_v3, %v1402_v3  ;;  %v583_v26 = vmul.f32 %v1427_v28, %v1427_v28  ;;  %s789_s28 = sshll.u32 %s1329_s26, 1  ;;  %s794_s29 = sshll.u32 %s1228_s16, 5 }
 0x15b   : > { %v585_v31 = vmul.f32 %v1437_v38, %v1437_v38  ;;  %v587_v36 = vmul.f32 %v1449_v48, %v1449_v48  ;;  %v589_v41 = vmul.f32 %v1466_v60, %v1466_v60  ;;  %s214_s17 = scalar_lea.vmem [#allocation8], %s789_s28  ;;  %vm628_vm0 = vcmask 1040384   ;;  %s1546_s8 = scalar_lea.hbm %s1586_s3, %s794_s29 }
 0x15c   : > { %v539_v9 = vadd.f32 %v538_v7, %v1397_v62  ;;  %v607_v11 = vadd.f32 %v606_v6, %v576_v5  ;;  %s666_s22 = sshll.u32 %s214_s17, 4  ;;  %s637_s9 = scalar_lea.sflag [#allocation9], %s1329_s26  ;;  %s667_s22 = int_to_ptr.vmem [resolvable:$true] %s666_s22 }
 0x15d   : > { %s1105_s7 = scalar_lea.vmem %s667_s22, 32  ;;  %s1186_s16 = smov [#allocation8]  }
 0x15e   : > { %v608_v14 = vadd.f32 %v607_v11, %v577_v10  ;;  %v540_v15 = vadd.f32 %v1392_v57, %v539_v9  ;;  %v582_v57 = vmul.f32 %v1412_v13, %v1412_v13  ;;  %p1106_p7 = scmp.ne.s32.totalorder %s667_s22, %s1105_s7  ;;  %s1109_s10 = sshll.u32 %s1186_s16, 4  ;;  %s1110_s10 = int_to_ptr.vmem [resolvable:$false] %s1109_s10 }
 0x15f   : > { %s1111_s11 = scalar_lea.vmem %s1110_s10, 64  ;;  %p1112_p12 = scmp.lt.s32.totalorder %s667_s22, %s1110_s10 }
 0x160   : > { %v541_v53 = vadd.f32 %v540_v15, %v1407_v8  ;;  %v609_v17 = vadd.f32 %v608_v14, %v578_v12  ;;  %p1107_p9 = pnand %p1106_p7, %p1602_p11  ;;  %p1113_p13 = scmp.lt.s32.totalorder %s1111_s11, %s1105_s7 }
 0x162   : > { %v610_v19 = vadd.f32 %v609_v17, %v579_v16  ;;  %v542_v20 = vadd.f32 %v1402_v3, %v541_v53  ;;  %v584_v3 = vmul.f32 %v1422_v23, %v1422_v23  ;;  %p1108_p10 = pneg %p1107_p9  ;;  %p1114_p0 = por %p1113_p13, %p1112_p12 }
 0x164   : > { %v543_v62 = vadd.f32 %v542_v20, %v1417_v18  ;;  %v611_v22 = vadd.f32 %v610_v19, %v580_v50  ;;  %p1115_p5 = pnand %p1114_p0, %p1108_p10 }
 0x166   : > { %v612_v24 = vadd.f32 %v611_v22, %v581_v21  ;;  %v544_v25 = vadd.f32 %v1412_v13, %v543_v62  ;;  %v586_v13 = vmul.f32 %v1432_v33, %v1432_v33 }
 0x168   : > { %v545_v8 = vadd.f32 %v544_v25, %v1427_v28  ;;  %v613_v27 = vadd.f32 %v612_v24, %v582_v57 }
 0x16a   : > { %v614_v29 = vadd.f32 %v613_v27, %v583_v26  ;;  %v546_v30 = vadd.f32 %v1422_v23, %v545_v8  ;;  %v588_v23 = vmul.f32 %v1442_v43, %v1442_v43 }
 0x16c   : > { %v547_v18 = vadd.f32 %v546_v30, %v1437_v38  ;;  %v615_v32 = vadd.f32 %v614_v29, %v584_v3 }
 0x16e   : > { %v616_v34 = vadd.f32 %v615_v32, %v585_v31  ;;  %v548_v35 = vadd.f32 %v1432_v33, %v547_v18  ;;  %v590_v33 = vmul.f32 %v1454_v55, %v1454_v55 }
 0x170   : > { %v549_v28 = vadd.f32 %v548_v35, %v1449_v48  ;;  %v617_v37 = vadd.f32 %v616_v34, %v586_v13 }
 0x172   : > { %v618_v39 = vadd.f32 %v617_v37, %v587_v36  ;;  %v550_v38 = vadd.f32 %v1442_v43, %v549_v28 }
 0x174   : > { %v551_v40 = vadd.f32 %v550_v38, %v1466_v60  ;;  %v619_v42 = vadd.f32 %v618_v39, %v588_v23 }
 0x176   : > { %v552_v44 = vadd.f32 %v1454_v55, %v551_v40  ;;  %v620_v45 = vadd.f32 %v619_v42, %v589_v41 }
 0x178   : > { %v553_v46 = vrot.slane %v552_v44, 4  ;;  %v621_v47 = vadd.f32 %v620_v45, %v590_v33 }
 0x17a   : > { %v554_v48 = vadd.f32 %v553_v46, %v552_v44  ;;  %v622_v49 = vrot.slane %v621_v47, 4 }
 0x17c   : > { %v555_v51 = vrot.slane %v554_v48, 2  ;;  %v623_v52 = vadd.f32 %v622_v49, %v621_v47 }
 0x17e   : > { %v556_v43 = vadd.f32 %v555_v51, %v554_v48  ;;  %v624_v54 = vrot.slane %v623_v52, 2 }
 0x180   : > { %v557_v56 = vrot.slane %v556_v43, 1  ;;  %v625_v58 = vadd.f32 %v624_v54, %v623_v52 }
 0x182   : > { %v626_v59 = vrot.slane %v625_v58, 1  ;;  %v558_v55 = vadd.f32 %v557_v56, %v556_v43 }
 0x184   : > { %v627_v60 = vadd.f32 %v626_v59, %v625_v58 }
 0x186   : > { %v629_v61 = vsel %vm628_vm0, %v558_v55, %v627_v60 }
 0x187   : > { %630 = vst [vmem:[%s214_s17] sm:$0x3] %v629_v61 }
 0x188   : > { %1118 = shalt.err (!%p1115_p5)
}
 0x189   : > { %s1119_s21 = scalar_lea.hbm %s1546_s8, 32  ;;  %s1123_s30 = scalar_lea.hbm %s1586_s3, 64 }
 0x18a   : > { %p1120_p2 = scmp.ne.s32.totalorder %s1546_s8, %s1119_s21  ;;  %p1124_p6 = scmp.lt.s32.totalorder %s1546_s8, %s1586_s3 }
 0x18b   : > { %p1125_p8 = scmp.lt.s32.totalorder %s1123_s30, %s1119_s21 }
 0x18c   : > { %p1121_p1 = pnand %p1120_p2, %p1602_p11 }
 0x18d   : > { %p1126_p3 = por %p1125_p8, %p1124_p6 }
 0x18e   : > { %p1122_p4 = pneg %p1121_p1 }
 0x190   : > { %p1127_p7 = pnand %p1126_p3, %p1122_p4 }
 0x192   : > { %1130 = shalt.err (!%p1127_p7)
}
 0x193   : > { %966 = dma.vmem_to_hbm [thread:$0]  (%p1602_p11), %s667_s22, 32, %s1546_s8, %s637_s9  }
 0x194 PF: > { %s678_s20 = sand.u32 1, %s1165_s12   ;;  %p1603_p9 = scmp.ne.s32.totalorder %s1592_s19, 0 }
 0x195   : > { %p1604_p10 = scmp.ge.s32.totalorder %s1177_s15, 2  ;;  %s679_s28 = scalar_lea.sflag [#allocation4], %s678_s20 }
 0x197   : > { %p978_p12 = pnand %p1604_p10, %p1603_p9 }
 0x199   : > { %p979_p13 = pneg %p978_p12 }
 0x19b   : > { %1156 = dma.done.wait (%p979_p13), %s679_s28, 4096  }
 0x19c   : > { %1158 = vsyncadd (%p979_p13), %s679_s28, 4294963200  ;;  %s688_s29 = scalar_lea.sflag [#allocation9], %s678_s20 }
 0x19d   : > { %1160 = dma.done.wait (%p979_p13), %s688_s29, 32  }
 0x19e   : > { %1162 = vsyncadd (%p979_p13), %s688_s29, 4294967264  ;;  %p21_p11 = scmp.ge.s32.totalorder %s1261_s24, 4   ;;  %s1605_s12 = smov %s1169_s13 }
 0x19f   : > { %s1606_s13 = smov %s1173_s14  ;;  %s1607_s14 = smov %s1281_s5 }
 0x1a0   : > { %s1608_s15 = smov %s1261_s24  ;;  %23 = sbr.rel (!%p21_p11) target bundleno = 8 (0x8), region = 94 }
 0x1a5   :  { %693 = vsyncpa [#allocation3], 1 }
 0x1a6   :  { %695 = vsyncpa [#allocation3 + $0x1], 1 }
 0x1a7   :  { %696 = vsyncpa [#allocation6], 1 }
 0x1a8   :  { %697 = vsyncpa [#allocation4], 1 }
 0x1a9   :  { %699 = vsyncpa [#allocation4 + $0x1], 1 }
 0x1aa   :  { %700 = vsyncpa [#allocation9], 1 }
 0x1ab   :  { %702 = vsyncpa [#allocation9 + $0x1], 1 }

</bundles_post_ra>
